<compile_context>
chip_gen: v7x
topology: tpu7x:2x2x1
jax: 0.10.0
libtpu: 0.0.40
codegen_flags: <defaults>
</compile_context>

<pallas_src>
import functools
import math

import numpy as np

import jax
import jax.numpy as jnp
from jax import lax
from jax.experimental import pallas as pl
from jax.experimental.pallas import tpu as pltpu


# Tap order is ky-major / kx-minor, matching the (Cout, ky, kx, Cin) weight reshape.
_TAPS = tuple((dy, dx) for dy in (-1, 0, 1) for dx in (-1, 0, 1))


# ------------------------------- Pallas kernel --------------------------------
def resblock_kernel(x_ref, m1_ref, m2_ref, w1_ref, w2_ref, o_ref, *, W, HW):
    """One batch element: x (Cin, HW) -> out (Cout, HW)."""
    x = x_ref[...]                                      # (Cin, HW) f32

    def tap_views(a):
        # view_t[:, p] = a[:, (p + dy*W + dx) mod HW]; wrapped lanes (image
        # borders) are zeroed by the prebroadcast mask.  pltpu.roll = XLU vrot
        # in the extended slot (no VALU slice/concat chains).
        views = []
        for dy, dx in _TAPS:
            d = dy * W + dx
            views.append(a if d == 0 else pltpu.roll(a, (-d) % HW, axis=1))
        return views

    def silu(v):                                        # EUP transcendental
        return v * jax.nn.sigmoid(v)

    ones = jnp.ones((1, HW), jnp.float32)

    # ---- conv_in(act(x)): one fused im2col MXU matmul; bias folded as a
    # trailing ones row in the patches / bias column in w1. ------------------
    a = silu(x)
    p1 = jnp.concatenate(tap_views(a) + [ones], axis=0) * m1_ref[...]
    h = jnp.dot(w1_ref[...], p1.astype(jnp.bfloat16),
                preferred_element_type=jnp.float32)     # (Cout, HW)

    # ---- conv_out(dropout(act(h))) + skip + biases + 1/scale, all fused into
    # ONE MXU matmul: patches2 = [im2col(silu(h)); x; ones] and w2 already
    # carries inv_scale * [w2 | w_skip | b2 + b_skip].  Dropout p=0 => identity.
    h = silu(h)
    p2 = jnp.concatenate(tap_views(h) + [x, ones], axis=0) * m2_ref[...]
    o_ref[...] = jnp.dot(w2_ref[...], p2.astype(jnp.bfloat16),
                         preferred_element_type=jnp.float32)


# ------------------------------- JAX wrapper -----------------------------------
def _smc_demodulated_weights(w, gamma, eps=1e-8):
    """Fold SMC modulation (per-in-channel gamma) + demodulation into the weights."""
    wmod = w * gamma.reshape(1, -1, 1, 1)                          # (Co, Ci, 3, 3)
    demod = lax.rsqrt(jnp.sum(wmod * wmod, axis=(1, 2, 3), keepdims=True) + eps)
    return wmod * demod


def _border_masks(H, W, reps):
    """(9*reps, H*W) {0,1} zero-padding mask, tap-major, each tap repeated `reps` rows."""
    pos = np.arange(H * W)
    r = pos // W
    c = pos % W
    rows = []
    for dy, dx in _TAPS:
        m = ((r + dy >= 0) & (r + dy < H) & (c + dx >= 0) & (c + dx < W))
        rows.append(np.repeat(m[None, :].astype(np.float32), reps, axis=0))
    return np.concatenate(rows, axis=0)


def resblock_forward(x_nchw, params, *, scale_factor):
    N, Cin, H, W = x_nchw.shape
    Cout = params["w1"].shape[0]
    assert params["w1"].shape[2:] == (3, 3)
    HW = H * W
    inv_scale = 1.0 / float(scale_factor)
    identity_skip = (Cin == Cout)

    k1 = 9 * Cin + 1            # im2col taps + bias row
    k2 = 9 * Cout + Cin + 1     # im2col taps + skip(x) rows + bias row

    def smc_mat(w, gamma):
        w_eff = _smc_demodulated_weights(w, gamma)
        co, ci = w_eff.shape[0], w_eff.shape[1]
        return jnp.transpose(w_eff, (0, 2, 3, 1)).reshape(co, 9 * ci)

    # conv_in:  [w1 | b1]                                  -> (Cout, k1), bf16
    w1_aug = jnp.concatenate(
        [smc_mat(params["w1"], params["gamma1"]),
         params["b1"].reshape(Cout, 1)], axis=1).astype(jnp.bfloat16)

    # conv_out + skip + biases + 1/scale folded into one matrix:
    #   inv_scale * [w2 | w_skip | b2 + b_skip]            -> (Cout, k2), bf16
    if identity_skip:
        wskip = jnp.eye(Cout, dtype=jnp.float32)
        bskip = jnp.zeros((Cout,), jnp.float32)
    else:                                        # use_conv=False -> 1x1 conv skip
        wskip = params["wskip"].reshape(Cout, Cin).astype(jnp.float32)
        bskip = params["bskip"].astype(jnp.float32)
    w2_aug = (inv_scale * jnp.concatenate(
        [smc_mat(params["w2"], params["gamma2"]),
         wskip,
         (params["b2"] + bskip).reshape(Cout, 1)], axis=1)).astype(jnp.bfloat16)

    # Host-prebroadcast border masks (one multiply per conv in the kernel):
    #   m1 rows: 9 taps x Cin channels  + 1 ones row (bias row)
    #   m2 rows: 9 taps x Cout channels + Cin+1 ones rows (skip + bias rows)
    m1 = jnp.asarray(np.concatenate(
        [_border_masks(H, W, Cin), np.ones((1, HW), np.float32)], axis=0))
    m2 = jnp.asarray(np.concatenate(
        [_border_masks(H, W, Cout), np.ones((Cin + 1, HW), np.float32)], axis=0))

    # NCHW -> (N, C, H*W): free, contiguous reshape (no transposes).
    x_flat = x_nchw.reshape(N, Cin, HW).astype(jnp.float32)

    kern = functools.partial(resblock_kernel, W=W, HW=HW)

    cost = pl.CostEstimate(
        flops=2 * N * HW * Cout * (k1 + k2),
        transcendentals=N * HW * (Cin + Cout),
        bytes_accessed=int(4 * (x_flat.size + m1.size + m2.size + N * Cout * HW)
                           + 2 * (w1_aug.size + w2_aug.size)),
    )

    out_flat = pl.pallas_call(
        kern,
        out_shape=jax.ShapeDtypeStruct((N, Cout, HW), jnp.float32),
        grid=(N,),
        in_specs=[
            pl.BlockSpec((None, Cin, HW), lambda n: (n, 0, 0)),   # x, one image/block
            pl.BlockSpec((k1, HW), lambda n: (0, 0)),             # mask1 (resident)
            pl.BlockSpec((k2, HW), lambda n: (0, 0)),             # mask2 (resident)
            pl.BlockSpec((Cout, k1), lambda n: (0, 0)),           # w1_aug (resident)
            pl.BlockSpec((Cout, k2), lambda n: (0, 0)),           # w2_aug (resident)
        ],
        out_specs=pl.BlockSpec((None, Cout, HW), lambda n: (n, 0, 0)),
        compiler_params=pltpu.CompilerParams(
            dimension_semantics=("parallel",)),                    # dual-TC on v7x
        cost_estimate=cost,
    )(x_flat, m1, m2, w1_aug, w2_aug)

    # (N, Cout, H*W) -> NCHW: free reshape.
    return out_flat.reshape(N, Cout, H, W)


# ----------------------------- pure-JAX reference ------------------------------
def resblock_reference(x_nchw, params, *, scale_factor):
    w1 = _smc_demodulated_weights(params["w1"], params["gamma1"])
    w2 = _smc_demodulated_weights(params["w2"], params["gamma2"])
    hp = lax.Precision.HIGHEST

    def conv3x3(h, w, b):
        y = lax.conv_general_dilated(
            h, w, window_strides=(1, 1), padding=((1, 1), (1, 1)),
            dimension_numbers=("NCHW", "OIHW", "NCHW"), precision=hp)
        return y + b.reshape(1, -1, 1, 1)

    h = jax.nn.silu(x_nchw)
    h = conv3x3(h, w1, params["b1"])
    h = jax.nn.silu(h)
    # dropout p=0: identity
    h = conv3x3(h, w2, params["b2"])

    Cin = x_nchw.shape[1]
    Cout = w1.shape[0]
    if Cin == Cout:
        skip = x_nchw
    else:
        skip = (jnp.einsum("nchw,oc->nohw", x_nchw, params["wskip"], precision=hp)
                + params["bskip"].reshape(1, -1, 1, 1))
    return (skip + h) / scale_factor


# ------------------------------------ main --------------------------------------
if __name__ == "__main__":
    # Module config: in_channels=8, out_channels=16, use_conv=False, dropout=0.0
    N, Cin, Cout, H, W = 2, 8, 16, 16, 16
    scale_factor = math.sqrt(2.0)

    key = jax.random.PRNGKey(0)
    ks = jax.random.split(key, 9)
    params = {
        "w1":     0.1 * jax.random.normal(ks[0], (Cout, Cin, 3, 3), jnp.float32),
        "gamma1": 1.0 + 0.1 * jax.random.normal(ks[1], (Cin,), jnp.float32),
        "b1":     0.1 * jax.random.normal(ks[2], (Cout,), jnp.float32),
        "w2":     0.1 * jax.random.normal(ks[3], (Cout, Cout, 3, 3), jnp.float32),
        "gamma2": 1.0 + 0.1 * jax.random.normal(ks[4], (Cout,), jnp.float32),
        "b2":     0.1 * jax.random.normal(ks[5], (Cout,), jnp.float32),
        "wskip":  0.1 * jax.random.normal(ks[6], (Cout, Cin), jnp.float32),
        "bskip":  0.1 * jax.random.normal(ks[7], (Cout,), jnp.float32),
    }
    x = jax.random.normal(ks[8], (N, Cin, H, W), jnp.float32)

    out = resblock_forward(x, params, scale_factor=scale_factor)
    out = jax.block_until_ready(out)
    ref = resblock_reference(x, params, scale_factor=scale_factor)
    ref = jax.block_until_ready(ref)

    assert out.shape == (N, Cout, H, W), out.shape
    max_err = float(jnp.max(jnp.abs(out - ref)))
    # Tolerance covers the explicit bf16 MXU inputs (reference runs in f32
    # HIGHEST precision); structural errors would be >= 1e-1.
    assert max_err < 5e-2, f"max abs error {max_err}"
    print("KERNEL_OK")
</pallas_src>

<mosaic_0001>
module attributes {stable_mosaic.version = 11 : i64} {
  func.func @resblock_kernel(%arg0: i32, %arg1: memref<1x8x256xf32, #tpu.memory_space<vmem>>, %arg2: memref<73x256xf32, #tpu.memory_space<vmem>>, %arg3: memref<153x256xf32, #tpu.memory_space<vmem>>, %arg4: memref<16x73xbf16, #tpu.memory_space<vmem>>, %arg5: memref<16x153xbf16, #tpu.memory_space<vmem>>, %arg6: memref<1x16x256xf32, #tpu.memory_space<vmem>>) attributes {dimension_semantics = [#tpu.dimension_semantics<parallel>], iteration_bounds = array<i64: 2>, scalar_prefetch = 0 : i64, scratch_operands = 0 : i64, tpu.core_type = #tpu.core_type<tc>, window_params = [{transform_indices = @transform_0, window_bounds = array<i64: 1, 8, 256>}, {pipeline_mode = #tpu.pipeline_mode<synchronous>, transform_indices = @transform_1, window_bounds = array<i64: 73, 256>}, {pipeline_mode = #tpu.pipeline_mode<synchronous>, transform_indices = @transform_2, window_bounds = array<i64: 153, 256>}, {pipeline_mode = #tpu.pipeline_mode<synchronous>, transform_indices = @transform_3, window_bounds = array<i64: 16, 73>}, {pipeline_mode = #tpu.pipeline_mode<synchronous>, transform_indices = @transform_4, window_bounds = array<i64: 16, 153>}, {transform_indices = @transform_5, window_bounds = array<i64: 1, 16, 256>}]} {
    %c0 = arith.constant 0 : index
    %c0_0 = arith.constant 0 : index
    %c0_1 = arith.constant 0 : index
    %0 = vector.load %arg1[%c0, %c0_0, %c0_1] : memref<1x8x256xf32, #tpu.memory_space<vmem>>, vector<1x8x256xf32>
    %1 = vector.shape_cast %0 : vector<1x8x256xf32> to vector<8x256xf32>
    %cst = arith.constant 1.000000e+00 : f32
    %2 = vector.broadcast %cst : f32 to vector<1x256xf32>
    %3 = arith.negf %1 : vector<8x256xf32>
    %4 = math.exp %3 : vector<8x256xf32>
    %cst_2 = arith.constant 1.000000e+00 : f32
    %5 = vector.broadcast %cst_2 : f32 to vector<8x256xf32>
    %6 = arith.addf %5, %4 : vector<8x256xf32>
    %7 = arith.divf %5, %6 : vector<8x256xf32>
    %8 = arith.mulf %1, %7 : vector<8x256xf32>
    %c17_i32 = arith.constant 17 : i32
    %9 = tpu.dynamic_rotate %8 by %c17_i32 dim 1 : vector<8x256xf32>, i32 -> vector<8x256xf32>
    %c16_i32 = arith.constant 16 : i32
    %10 = tpu.dynamic_rotate %8 by %c16_i32 dim 1 : vector<8x256xf32>, i32 -> vector<8x256xf32>
    %c15_i32 = arith.constant 15 : i32
    %11 = tpu.dynamic_rotate %8 by %c15_i32 dim 1 : vector<8x256xf32>, i32 -> vector<8x256xf32>
    %c1_i32 = arith.constant 1 : i32
    %12 = tpu.dynamic_rotate %8 by %c1_i32 dim 1 : vector<8x256xf32>, i32 -> vector<8x256xf32>
    %c255_i32 = arith.constant 255 : i32
    %13 = tpu.dynamic_rotate %8 by %c255_i32 dim 1 : vector<8x256xf32>, i32 -> vector<8x256xf32>
    %c241_i32 = arith.constant 241 : i32
    %14 = tpu.dynamic_rotate %8 by %c241_i32 dim 1 : vector<8x256xf32>, i32 -> vector<8x256xf32>
    %c240_i32 = arith.constant 240 : i32
    %15 = tpu.dynamic_rotate %8 by %c240_i32 dim 1 : vector<8x256xf32>, i32 -> vector<8x256xf32>
    %c239_i32 = arith.constant 239 : i32
    %16 = tpu.dynamic_rotate %8 by %c239_i32 dim 1 : vector<8x256xf32>, i32 -> vector<8x256xf32>
    %17 = tpu.concatenate %9, %10, %11, %12, %8, %13, %14, %15, %16, %2 in 0 : vector<8x256xf32>, vector<8x256xf32>, vector<8x256xf32>, vector<8x256xf32>, vector<8x256xf32>, vector<8x256xf32>, vector<8x256xf32>, vector<8x256xf32>, vector<8x256xf32>, vector<1x256xf32> -> vector<73x256xf32>
    %c0_3 = arith.constant 0 : index
    %c0_4 = arith.constant 0 : index
    %18 = vector.load %arg2[%c0_3, %c0_4] : memref<73x256xf32, #tpu.memory_space<vmem>>, vector<73x256xf32>
    %19 = arith.mulf %17, %18 : vector<73x256xf32>
    %c0_5 = arith.constant 0 : index
    %c0_6 = arith.constant 0 : index
    %20 = vector.load %arg4[%c0_5, %c0_6] : memref<16x73xbf16, #tpu.memory_space<vmem>>, vector<16x73xbf16>
    %21 = arith.truncf %19 : vector<73x256xf32> to vector<73x256xbf16>
    %cst_7 = arith.constant dense<0.000000e+00> : vector<16x256xf32>
    %22 = tpu.matmul %20, %21, %cst_7 {dimension_numbers = #tpu.dot_dimension_numbers<[1], [0], [0], [1], [0, 0, 1, 1], [], []>} : vector<16x73xbf16>, vector<73x256xbf16>, vector<16x256xf32> -> vector<16x256xf32>
    %23 = arith.negf %22 : vector<16x256xf32>
    %24 = math.exp %23 : vector<16x256xf32>
    %cst_8 = arith.constant 1.000000e+00 : f32
    %25 = vector.broadcast %cst_8 : f32 to vector<16x256xf32>
    %26 = arith.addf %25, %24 : vector<16x256xf32>
    %27 = arith.divf %25, %26 : vector<16x256xf32>
    %28 = arith.mulf %22, %27 : vector<16x256xf32>
    %c17_i32_9 = arith.constant 17 : i32
    %29 = tpu.dynamic_rotate %28 by %c17_i32_9 dim 1 : vector<16x256xf32>, i32 -> vector<16x256xf32>
    %c16_i32_10 = arith.constant 16 : i32
    %30 = tpu.dynamic_rotate %28 by %c16_i32_10 dim 1 : vector<16x256xf32>, i32 -> vector<16x256xf32>
    %c15_i32_11 = arith.constant 15 : i32
    %31 = tpu.dynamic_rotate %28 by %c15_i32_11 dim 1 : vector<16x256xf32>, i32 -> vector<16x256xf32>
    %c1_i32_12 = arith.constant 1 : i32
    %32 = tpu.dynamic_rotate %28 by %c1_i32_12 dim 1 : vector<16x256xf32>, i32 -> vector<16x256xf32>
    %c255_i32_13 = arith.constant 255 : i32
    %33 = tpu.dynamic_rotate %28 by %c255_i32_13 dim 1 : vector<16x256xf32>, i32 -> vector<16x256xf32>
    %c241_i32_14 = arith.constant 241 : i32
    %34 = tpu.dynamic_rotate %28 by %c241_i32_14 dim 1 : vector<16x256xf32>, i32 -> vector<16x256xf32>
    %c240_i32_15 = arith.constant 240 : i32
    %35 = tpu.dynamic_rotate %28 by %c240_i32_15 dim 1 : vector<16x256xf32>, i32 -> vector<16x256xf32>
    %c239_i32_16 = arith.constant 239 : i32
    %36 = tpu.dynamic_rotate %28 by %c239_i32_16 dim 1 : vector<16x256xf32>, i32 -> vector<16x256xf32>
    %37 = tpu.concatenate %29, %30, %31, %32, %28, %33, %34, %35, %36, %1, %2 in 0 : vector<16x256xf32>, vector<16x256xf32>, vector<16x256xf32>, vector<16x256xf32>, vector<16x256xf32>, vector<16x256xf32>, vector<16x256xf32>, vector<16x256xf32>, vector<16x256xf32>, vector<8x256xf32>, vector<1x256xf32> -> vector<153x256xf32>
    %c0_17 = arith.constant 0 : index
    %c0_18 = arith.constant 0 : index
    %38 = vector.load %arg3[%c0_17, %c0_18] : memref<153x256xf32, #tpu.memory_space<vmem>>, vector<153x256xf32>
    %39 = arith.mulf %37, %38 : vector<153x256xf32>
    %c0_19 = arith.constant 0 : index
    %c0_20 = arith.constant 0 : index
    %40 = vector.load %arg5[%c0_19, %c0_20] : memref<16x153xbf16, #tpu.memory_space<vmem>>, vector<16x153xbf16>
    %41 = arith.truncf %39 : vector<153x256xf32> to vector<153x256xbf16>
    %cst_21 = arith.constant dense<0.000000e+00> : vector<16x256xf32>
    %42 = tpu.matmul %40, %41, %cst_21 {dimension_numbers = #tpu.dot_dimension_numbers<[1], [0], [0], [1], [0, 0, 1, 1], [], []>} : vector<16x153xbf16>, vector<153x256xbf16>, vector<16x256xf32> -> vector<16x256xf32>
    %c0_22 = arith.constant 0 : index
    %c0_23 = arith.constant 0 : index
    %c0_24 = arith.constant 0 : index
    %43 = vector.load %arg6[%c0_22, %c0_23, %c0_24] : memref<1x16x256xf32, #tpu.memory_space<vmem>>, vector<1x16x256xf32>
    %44 = vector.shape_cast %43 : vector<1x16x256xf32> to vector<16x256xf32>
    %45 = vector.shape_cast %42 : vector<16x256xf32> to vector<1x16x256xf32>
    tpu.vector_store %arg6[%c0_22, %c0_23, %c0_24], %45 {strides = array<i32>} : memref<1x16x256xf32, #tpu.memory_space<vmem>>, vector<1x16x256xf32>,
    return
  }
  func.func @transform_0(%arg0: i32) -> (i32, i32, i32) {
    %c0_i32 = arith.constant 0 : i32
    %c0_i32_0 = arith.constant 0 : i32
    %c0_i32_1 = arith.constant 0 : i32
    return %arg0, %c0_i32, %c0_i32_0 : i32, i32, i32
  }
  func.func @transform_1(%arg0: i32) -> (i32, i32) {
    %c0_i32 = arith.constant 0 : i32
    %c0_i32_0 = arith.constant 0 : i32
    %c0_i32_1 = arith.constant 0 : i32
    return %c0_i32, %c0_i32_0 : i32, i32
  }
  func.func @transform_2(%arg0: i32) -> (i32, i32) {
    %c0_i32 = arith.constant 0 : i32
    %c0_i32_0 = arith.constant 0 : i32
    %c0_i32_1 = arith.constant 0 : i32
    return %c0_i32, %c0_i32_0 : i32, i32
  }
  func.func @transform_3(%arg0: i32) -> (i32, i32) {
    %c0_i32 = arith.constant 0 : i32
    %c0_i32_0 = arith.constant 0 : i32
    %c0_i32_1 = arith.constant 0 : i32
    return %c0_i32, %c0_i32_0 : i32, i32
  }
  func.func @transform_4(%arg0: i32) -> (i32, i32) {
    %c0_i32 = arith.constant 0 : i32
    %c0_i32_0 = arith.constant 0 : i32
    %c0_i32_1 = arith.constant 0 : i32
    return %c0_i32, %c0_i32_0 : i32, i32
  }
  func.func @transform_5(%arg0: i32) -> (i32, i32, i32) {
    %c0_i32 = arith.constant 0 : i32
    %c0_i32_0 = arith.constant 0 : i32
    %c0_i32_1 = arith.constant 0 : i32
    return %arg0, %c0_i32, %c0_i32_0 : i32, i32, i32
  }
}

</mosaic_0001>

<bundles_post_ra>
// kernel: tpu_custom_call.1
= control target key start
LH: loop header
LB: loop body
LE: loop exit
PB: predicated region body
PF: predicated region fallthrough
CT: control target
= control target key end

     0   :  { %10 = vsyncpa [#allocation3], 0  ;;  %s1778_s0 = inlined_call_operand.hbm [shape: f32[2,8,256], index: 0, kind: input, shape index: {}]   ;;  %s1779_s1 = inlined_call_operand.hbm [shape: f32[73,256], index: 1, kind: input, shape index: {}]   ;;  %s1780_s2 = inlined_call_operand.hbm [shape: f32[153,256], index: 2, kind: input, shape index: {}]   ;;  %s1781_s3 = inlined_call_operand.vmem [shape: bf16[16,73], index: 3, kind: input, shape index: {}]   ;;  %s1782_s4 = inlined_call_operand.hbm [shape: bf16[16,153], index: 4, kind: input, shape index: {}]   ;;  %s1783_s5 = inlined_call_operand.hbm [shape: f32[2,16,256], index: 5, kind: output, shape index: {}]  }
   0x1   :  { %12 = vsyncpa [#allocation3 + $0x1], 0 }
   0x2   :  { %13 = vsyncpa [#allocation6], 0 }
   0x3   :  { %14 = vsyncpa [#allocation9], 0 }
   0x4   :  { %15 = vsyncpa [#allocation4], 0 }
   0x5   :  { %17 = vsyncpa [#allocation4 + $0x1], 0  ;;  %s1271_s18 = smov 0   ;;  %s1273_s19 = smov 0  }
   0x6   :  { %s1275_s20 = smov 0   ;;  %s1277_s21 = smov 0  }
   0x7 LB: > { %s1292_s22 = sadd.s32 4294967295, %s1219_s21   ;;  %s878_s23 = sadd.s32 4294967294, %s1219_s21   ;;  %s1219_s21 = sphi %s1277_s21, %s1806_s21   ;;  %s1215_s20 = sphi %s1275_s20, %s1805_s20   ;;  %s1211_s19 = sphi %s1273_s19, %s1804_s19   ;;  %s1207_s18 = sphi %s1271_s18, %s1803_s18  }
   0x8   : > { %p43_p0 = scmp.ne.s32.totalorder %s1211_s19, %s1207_s18  ;;  %p1784_p1 = scmp.eq.s32.totalorder %s1292_s22, 0 }
   0x9   : > { %p157_p3 = scmp.eq.s32.totalorder %s878_s23, 1  ;;  %p879_p5 = scmp.ge.s32.totalorder %s1219_s21, 1 }
   0xa   : > { %p1301_p4 = por %p1784_p1, %p43_p0  ;;  %p164_p7 = scmp.lt.s32.totalorder %s1219_s21, 3 }
   0xb   : > { %p1306_p6 = por %p157_p3, %p43_p0  ;;  %s1221_s27 = smov [#allocation5]  }
   0xc   : > { %s1787_s24 = scalar_select %p1301_p4, 1, 0 }
   0xd   : > { %s1788_s25 = scalar_select %p1306_p6, 1, 0 }
   0xe   : > { %p1311_p8 = pnand %p879_p5, %p164_p7  ;;  %s176_s28 = sshll.u32 %s1221_s27, 4  ;;  %s1315_s28 = int_to_ptr.vmem [resolvable:$true] %s176_s28 }
   0xf   : > { %s1222_s30 = smov [#allocation7]   ;;  %s1223_s7 = smov [#allocation8]  }
  0x10   : > { %s1789_s26 = scalar_select %p1311_p8, 1, 0 }
  0x11   : > { %p927_p9 = pneg %p1311_p8  ;;  %s189_s6 = sshll.u32 %s1222_s30, 4  ;;  %s1326_s6 = int_to_ptr.vmem [resolvable:$true] %s189_s6 }
  0x12   : > { %s1328_s8 = sshll.u32 %s1223_s7, 4  ;;  %s1031_s11 = scalar_lea.hbm %s1779_s1, 2560  ;;  %s206_s8 = int_to_ptr.vmem [resolvable:$true] %s1328_s8 }
  0x13   : > { %p1322_p11 = pnand %p927_p9, %p1784_p1  ;;  %p1032_p12 = scmp.ne.s32.totalorder %s1779_s1, %s1031_s11 }
  0x14   : > { %p1038_p5 = scmp.lt.u32.totalorder %s1031_s11, %s1779_s1 }
  0x15   : > { %p1338_p13 = pneg %p1322_p11 }
  0x17   : > { %p1034_p0 = pnand %p1338_p13, %p1032_p12 }
  0x19   : > { %p1035_p3 = pneg %p1034_p0 }
  0x1b   : > { %p1040_p7 = pnand %p1038_p5, %p1035_p3 }
  0x1d   : > { %1043 = shalt.err (!%p1040_p7)
}
  0x1e   : > { %s1044_s17 = scalar_lea.vmem %s1315_s28, 2560  ;;  %p1052_p2 = scmp.lt.s32.totalorder %s1315_s28, %s1315_s28 }
  0x1f   : > { %p1045_p9 = scmp.ne.s32.totalorder %s1315_s28, %s1044_s17  ;;  %p1053_p6 = scmp.lt.s32.totalorder %s1044_s17, %s1044_s17 }
  0x21   : > { %p1047_p10 = pnand %p1045_p9, %p1338_p13  ;;  %p1054_p12 = por %p1053_p6, %p1052_p2 }
  0x23   : > { %p1048_p1 = pneg %p1047_p10 }
  0x25   : > { %p1055_p0 = pnand %p1054_p12, %p1048_p1 }
  0x27   : > { %1058 = shalt.err (!%p1055_p0)
}
  0x28   : > { %s1224_s23 = smov 256   ;;  %s1225_s27 = smov 16  }
  0x29   : > { %930 = dma.hbm_to_vmem [thread:$0]  (!%p1322_p11), %s1779_s1, 2560, %s1315_s28, [#allocation6], %s1224_s23, %s1224_s23, %s1225_s27  }
  0x2a   : > { %s1059_s11 = scalar_lea.hbm %s1780_s2, 5120 }
  0x2b   : > { %p1060_p2 = scmp.ne.s32.totalorder %s1780_s2, %s1059_s11  ;;  %p1066_p10 = scmp.lt.u32.totalorder %s1059_s11, %s1780_s2 }
  0x2d   : > { %p1062_p1 = pnand %p1060_p2, %p1338_p13 }
  0x2f   : > { %p1063_p6 = pneg %p1062_p1 }
  0x31   : > { %p1068_p3 = pnand %p1066_p10, %p1063_p6 }
  0x33   : > { %1071 = shalt.err (!%p1068_p3)
}
  0x34   : > { %s1072_s28 = scalar_lea.vmem %s1326_s6, 5120  ;;  %p1080_p12 = scmp.lt.s32.totalorder %s1326_s6, %s1326_s6 }
  0x35   : > { %p1073_p5 = scmp.ne.s32.totalorder %s1326_s6, %s1072_s28  ;;  %p1081_p0 = scmp.lt.s32.totalorder %s1072_s28, %s1072_s28 }
  0x37   : > { %p1075_p7 = pnand %p1073_p5, %p1338_p13  ;;  %p1082_p2 = por %p1081_p0, %p1080_p12 }
  0x39   : > { %p1076_p9 = pneg %p1075_p7 }
  0x3b   : > { %p1083_p1 = pnand %p1082_p2, %p1076_p9 }
  0x3d   : > { %1086 = shalt.err (!%p1083_p1)
}
  0x3e   : > { %933 = dma.hbm_to_vmem [thread:$0]  (!%p1322_p11), %s1780_s2, 5120, %s1326_s6, [#allocation6], %s1224_s23, %s1224_s23, %s1225_s27  }
  0x3f   : > { %s1087_s10 = scalar_lea.hbm %s1782_s4, 256 }
  0x40   : > { %p1088_p6 = scmp.ne.s32.totalorder %s1782_s4, %s1087_s10  ;;  %p1094_p5 = scmp.lt.u32.totalorder %s1087_s10, %s1782_s4 }
  0x42   : > { %p1090_p10 = pnand %p1088_p6, %p1338_p13 }
  0x44   : > { %p1091_p3 = pneg %p1090_p10 }
  0x46   : > { %p1096_p7 = pnand %p1094_p5, %p1091_p3 }
  0x48   : > { %1099 = shalt.err (!%p1096_p7)
}
  0x49   : > { %s1100_s16 = scalar_lea.vmem %s206_s8, 256  ;;  %p1108_p2 = scmp.lt.s32.totalorder %s206_s8, %s206_s8 }
  0x4a   : > { %p1101_p9 = scmp.ne.s32.totalorder %s206_s8, %s1100_s16  ;;  %p1109_p1 = scmp.lt.s32.totalorder %s1100_s16, %s1100_s16 }
  0x4c   : > { %p1103_p12 = pnand %p1101_p9, %p1338_p13  ;;  %p1110_p4 = por %p1109_p1, %p1108_p2 }
  0x4e   : > { %p1104_p0 = pneg %p1103_p12 }
  0x50   : > { %p1111_p8 = pnand %p1110_p4, %p1104_p0 }
  0x52   : > { %1114 = shalt.err (!%p1111_p8)
}
  0x53   : > { %s1226_s6 = smov 128   ;;  %s1227_s14 = smov 8  }
  0x54   : > { %936 = dma.hbm_to_vmem [thread:$0]  (!%p1322_p11), %s1782_s4, 256, %s206_s8, [#allocation9], %s1226_s6, %s1226_s6, %s1227_s14  }
  0x55   : > { %s1402_s28 = sadd.s32 1, %s1219_s21   ;;  %s30_s30 = sadd.s32 1, %s1215_s20 }
  0x56   : > { %s27_s17 = ssub.s32 %s1219_s21, %s1402_s28  ;;  %p37_p8 = scmp.ne.s32.totalorder %s1215_s20, %s1211_s19 }
  0x57   : > { %p28_p4 = scmp.eq.s32.totalorder %s27_s17, 0  ;;  %p38_p13 = scmp.eq.s32.totalorder %s1219_s21, 0 }
  0x58   : > { %p948_p6 = scmp.lt.s32.totalorder %s1219_s21, 2  ;;  %p1792_p3 = scmp.eq.s32.totalorder %s1292_s22, 1 }
  0x59   : > { %s1412_s7 = scalar_select %p28_p4, %s1215_s20, %s30_s30  }
  0x5a   : > { %p39_p10 = por %p38_p13, %p37_p8  ;;  %p1416_p5 = por %p1792_p3, %p37_p8 }
  0x5b   : > { %s219_s29 = sand.u32 1, %s1215_s20   ;;  %s909_s10 = sshll.u32 %s1219_s21, 8 }
  0x5c   : > { %s884_s8 = sshll.u32 %s219_s29, 4  ;;  %s1425_s13 = scalar_lea.hbm %s1778_s0, %s909_s10 }
  0x5d   : > { %s223_s15 = scalar_lea.vmem [#allocation2], %s884_s8  ;;  %p1427_p11 = pnand %p948_p6, %p39_p10 }
  0x5e   : > { %s231_s16 = sshll.u32 %s223_s15, 4  ;;  %s220_s14 = scalar_lea.sflag [#allocation3], %s219_s29  ;;  %s1431_s16 = int_to_ptr.vmem [resolvable:$true] %s231_s16 }
  0x5f   : > { %s1115_s23 = scalar_lea.hbm %s1425_s13, 256  ;;  %p1117_p9 = pneg %p1427_p11 }
  0x60   : > { %p1116_p7 = scmp.ne.s32.totalorder %s1425_s13, %s1115_s23  ;;  %s1120_s30 = scalar_lea.hbm %s1778_s0, 512 }
  0x61   : > { %p1121_p2 = scmp.lt.u32.totalorder %s1425_s13, %s1778_s0  ;;  %p1122_p1 = scmp.lt.u32.totalorder %s1120_s30, %s1115_s23 }
  0x62   : > { %p1118_p12 = pnand %p1117_p9, %p1116_p7  ;;  %p1124_p8 = scmp.lt.u32.totalorder %s1115_s23, %s1425_s13 }
  0x63   : > { %p1123_p4 = por %p1122_p1, %p1121_p2 }
  0x64   : > { %p1119_p0 = pneg %p1118_p12 }
  0x65   : > { %p1125_p13 = por %p1124_p8, %p1123_p4 }
  0x67   : > { %p1126_p6 = pnand %p1125_p13, %p1119_p0 }
  0x69   : > { %1129 = shalt.err (!%p1126_p6)
}
  0x6a   : > { %s1130_s29 = scalar_lea.vmem %s1431_s16, 256  ;;  %s1228_s11 = smov [#allocation2]  }
  0x6b   : > { %p1131_p10 = scmp.ne.s32.totalorder %s1431_s16, %s1130_s29  ;;  %s1135_s12 = sshll.u32 %s1228_s11, 4  ;;  %s1136_s12 = int_to_ptr.vmem [resolvable:$false] %s1135_s12 }
  0x6c   : > { %s1137_s15 = scalar_lea.vmem %s1136_s12, 512  ;;  %p1138_p12 = scmp.lt.s32.totalorder %s1431_s16, %s1136_s12 }
  0x6d   : > { %p1133_p3 = pnand %p1131_p10, %p1117_p9  ;;  %p1139_p2 = scmp.lt.s32.totalorder %s1137_s15, %s1130_s29 }
  0x6f   : > { %p1134_p7 = pneg %p1133_p3  ;;  %p1140_p1 = por %p1139_p2, %p1138_p12 }
  0x71   : > { %p1141_p4 = pnand %p1140_p1, %p1134_p7 }
  0x73   : > { %1144 = shalt.err (!%p1141_p4)
}
  0x74   : > { %940 = dma.hbm_to_vmem [thread:$0]  (!%p1427_p11), %s1425_s13, 256, %s1431_s16, %s220_s14  }
  0x75   : > { %p1795_p0 = scmp.ne.s32.totalorder %s1789_s26, 0 }
  0x76   : > { %s1461_s23 = sand.u32 (!%p1795_p0), 1, %s1211_s19   ;;  %p1796_p9 = scmp.ne.s32.totalorder (!%p1795_p0), %s1787_s24, 0 }
  0x77   : > { %240 = sbr.rel (%p1795_p0) target bundleno = 976 (0x3d0), region = 40  ;;  %s888_s27 = sshll.u32 (!%p1795_p0), %s1461_s23, 4 }
  0x78   : > { %s243_s17 = scalar_lea.sflag (!%p1795_p0), [#allocation3], %s1461_s23  ;;  %s246_s30 = scalar_lea.vmem (!%p1795_p0), [#allocation2], %s888_s27 }
  0x7e   : > { %1190 = dma.done.wait (%p1796_p9), %s243_s17, 256  }
  0x7f   : > { %1192 = vsyncadd (%p1796_p9), %s243_s17, 4294967040  ;;  %p1797_p8 = scmp.eq.s32.totalorder %s1292_s22, 0 }
  0x81   : > { %1194 = dma.done.wait (%p1797_p8), [#allocation6], 7680   ;;  %p1798_p11 = pmov %p1797_p8 }
  0x82   : > { %p1799_p13 = pmov %p1797_p8 }
  0x83   : > { %1196 = vsyncadd (%p1798_p11), [#allocation6], 4294959616 }
  0x84   : > { %1198 = dma.done.wait (%p1799_p13), [#allocation9], 256   ;;  %p1800_p6 = pmov %p1797_p8 }
  0x85   : > { %v1477_v0 = vld [vmem:[%s246_s30] sm:$0xff]  ;;  %v1479_v1 = vld [vmem:[%s246_s30 + $0x8] sm:$0xff]  ;;  %s1229_s24 = smov 16   ;;  %s1230_s26 = smov 17   ;;  %v1236_v12 = vmov 0   ;;  %v306_v13 = vlaneseq  ;;  %vm419_vm8 = vcmask 1043456  }
  0x86   : > { %1200 = vsyncadd (%p1800_p6), [#allocation9], 4294967040  ;;  %v893_v2 = vmul.f32 -1.442695, %v1477_v0  ;;  %v894_v3 = vmul.f32 -1.442695, %v1479_v1  ;;  %461 = vmatprep.mubr.bf16.mxu0 %v1236_v12 }
  0x87   : > { %s1231_s13 = smov 15   ;;  %s1232_s16 = smov 1   ;;  %v1521_v14 = vand.u32 127, %v306_v13  ;;  %v362_v17 = vld [vmem:[#allocation5 + $0x10] sm:$0xff]  ;;  %v360_v18 = vld [vmem:[#allocation5] sm:$0xff]  ;;  %v361_v19 = vld [vmem:[#allocation5 + $0x8] sm:$0xff] }
  0x88   : > { %1007 = vpow2.f32 %v893_v2  ;;  %s1233_s6 = smov 127   ;;  %s1234_s14 = smov 113   ;;  %v363_v20 = vld [vmem:[#allocation5 + $0x18] sm:$0xff]  ;;  %v364_v35 = vld [vmem:[#allocation5 + $0x20] sm:$0xff]  ;;  %v365_v36 = vld [vmem:[#allocation5 + $0x28] sm:$0xff]  ;;  %vm420_vm9 = vcmask 1044480  }
  0x89   : > { %1009 = vpow2.f32 %v894_v3  ;;  %s1235_s10 = smov 112   ;;  %s1237_s8 = smov 111   ;;  %vm315_vm0 = vcmp.lt.s32.totalorder %v1521_v14, 16  ;;  %vm308_vm1 = vcmp.lt.s32.totalorder %v1521_v14, 17  ;;  %vm322_vm2 = vcmp.lt.s32.totalorder %v1521_v14, 15  ;;  %v366_v39 = vld [vmem:[#allocation5 + $0x30] sm:$0xff] }
  0x8a   : > { %vm329_vm3 = vcmp.lt.s32.totalorder %v1521_v14, 1  ;;  %v367_v40 = vld [vmem:[#allocation5 + $0x38] sm:$0xff]  ;;  %vm336_vm4 = vcmp.lt.s32.totalorder %v1521_v14, 127  ;;  %v369_v45 = vld [vmem:[#allocation5 + $0x48] sm:$0xff]  ;;  %v368_v46 = vld [vmem:[#allocation5 + $0x40] sm:$0xff]  ;;  %vm343_vm5 = vcmp.lt.s32.totalorder %v1521_v14, 113 }
  0x8b   : > { %v370_v51 = vld [vmem:[#allocation5 + $0x50] sm:$0xff]  ;;  %v371_v52 = vld [vmem:[#allocation5 + $0x58] sm:$0xff]  ;;  %vm350_vm6 = vcmp.lt.s32.totalorder %v1521_v14, 112  ;;  %vm357_vm7 = vcmp.lt.s32.totalorder %v1521_v14, 111  ;;  %vm415_vm10 = vcmask 596992   ;;  %vm705_vm11 = vcmask 203776  }
  0x8c   : > { %v1004_v14 = vld [vmem:[#allocation8] ss:$8 sps:$4 sm:$0xff]   ;;  %s892_s12 = sshll.u32 %s1461_s23, 5  ;;  %s910_s17 = sshll.u32 %s1292_s22, 9 }
  0x8d   : > { %s284_s15 = scalar_lea.vmem [#allocation10], %s892_s12 }
  0x8e   : > { %s776_s27 = sshll.u32 %s284_s15, 4  ;;  %s1728_s27 = int_to_ptr.vmem [resolvable:$true] %s776_s27 }
  0x8f   : > { %s1145_s22 = scalar_lea.vmem %s1728_s27, 512 }
  0x90   : > { %p1146_p10 = scmp.ne.s32.totalorder %s1728_s27, %s1145_s22 }
  0x92   : > { %v1008_v4 = vpop.eup %1007  ;;  %p1147_p3 = pnand %p1146_p10, %p1416_p5 }
  0x93   : > { %v1010_v5 = vpop.eup %1009  ;;  %v294_v6 = vadd.f32 1.0, %v1008_v4 }
  0x94   : > { %v295_v7 = vadd.f32 1.0, %v1010_v5  ;;  %v372_v5 = vld [vmem:[#allocation5 + $0x60] sm:$0xff]  ;;  %p1148_p7 = pneg %p1147_p3 }
  0x95   : > { %1011 = vrcp.f32 %v294_v6  ;;  %v373_v6 = vld [vmem:[#allocation5 + $0x68] sm:$0xff] }
  0x96   : > { %1013 = vrcp.f32 %v295_v7 }
  0x9f   : > { %v1012_v8 = vpop.eup %1011 }
  0xa0   : > { %v1014_v9 = vpop.eup %1013  ;;  %v1484_v10 = vmul.f32 %v1012_v8, %v1477_v0 }
  0xa1   : > { %v1491_v11 = vmul.f32 %v1014_v9, %v1479_v1  ;;  %v374_v9 = vld [vmem:[#allocation5 + $0x70] sm:$0xff] }
  0xa2   : > { %311 = vrot.lane.b32.xlu1 %v1484_v10, %s1229_s24  ;;  %302 = vrot.lane.b32.xlu0 %v1484_v10, %s1230_s26  ;;  %v388_v58 = vmul.f32 %v368_v46, %v1484_v10 }
  0xa3   : > { %v389_v57 = vmul.f32 %v369_v45, %v1491_v11 }
  0xa6   : > { %313 = vrot.lane.b32.xlu1 %v1491_v11, %s1229_s24  ;;  %304 = vrot.lane.b32.xlu0 %v1491_v11, %s1230_s26 }
  0xaa   : > { %320 = vrot.lane.b32.xlu1 %v1491_v11, %s1231_s13  ;;  %318 = vrot.lane.b32.xlu0 %v1484_v10, %s1231_s13 }
  0xae   : > { %327 = vrot.lane.b32.xlu1 %v1491_v11, %s1232_s16  ;;  %325 = vrot.lane.b32.xlu0 %v1484_v10, %s1232_s16 }
  0xb2   : > { %334 = vrot.lane.b32.xlu1 %v1491_v11, %s1233_s6  ;;  %332 = vrot.lane.b32.xlu0 %v1484_v10, %s1233_s6 }
  0xb6   : > { %341 = vrot.lane.b32.xlu1 %v1491_v11, %s1234_s14  ;;  %339 = vrot.lane.b32.xlu0 %v1484_v10, %s1234_s14 }
  0xba   : > { %348 = vrot.lane.b32.xlu1 %v1491_v11, %s1235_s10  ;;  %346 = vrot.lane.b32.xlu0 %v1484_v10, %s1235_s10 }
  0xbe   : > { %355 = vrot.lane.b32.xlu1 %v1491_v11, %s1237_s8  ;;  %353 = vrot.lane.b32.xlu0 %v1484_v10, %s1237_s8  ;;  %v375_v10 = vld [vmem:[#allocation5 + $0x78] sm:$0xff] }
 0x114   : > { %v312_v15 = vpop.permute.xlu1 %311  ;;  %v303_v16 = vpop.permute.xlu0 %302 }
 0x118   : > { %v314_v21 = vpop.permute.xlu1 %313  ;;  %v305_v22 = vpop.permute.xlu0 %304 }
 0x119   : > { %v316_v23 = vsel %vm315_vm0, %v312_v15, %v314_v21  ;;  %v317_v24 = vsel %vm315_vm0, %v314_v21, %v312_v15  ;;  %v309_v25 = vsel %vm308_vm1, %v303_v16, %v305_v22  ;;  %v310_v26 = vsel %vm308_vm1, %v305_v22, %v303_v16  ;;  %v377_v21 = vld [vmem:[#allocation5 + $0x88] sm:$0xff] }
 0x11a   : > { %v382_v27 = vmul.f32 %v362_v17, %v317_v24  ;;  %v380_v28 = vmul.f32 %v360_v18, %v310_v26  ;;  %v381_v29 = vmul.f32 %v361_v19, %v309_v25  ;;  %v383_v30 = vmul.f32 %v363_v20, %v316_v23  ;;  %v376_v20 = vld [vmem:[#allocation5 + $0x80] sm:$0xff] }
 0x11b   : > { %v1238_v26 = vmov 65535  }
 0x11c   : > { %v321_v31 = vpop.permute.xlu1 %320  ;;  %v319_v32 = vpop.permute.xlu0 %318  ;;  %v401_v33 = vpack.c.bf16 %v383_v30, %v381_v29  ;;  %v400_v34 = vpack.c.bf16 %v382_v27, %v380_v28  ;;  %v421_v27 = vsel %vm419_vm8, 4294967295, %v1238_v26  ;;  %v378_v28 = vld [vmem:[#allocation5 + $0x90] sm:$0x1]  ;;  %v379_v29 = vld [vmem:[#allocation5 + $0x98] sm:$0x1] }
 0x11d   : > { %v323_v37 = vsel %vm322_vm2, %v319_v32, %v321_v31  ;;  %v324_v38 = vsel %vm322_vm2, %v321_v31, %v319_v32 }
 0x11e   : > { %429 = vmatprep.subr.bf16.mxu0 %v401_v33  ;;  %v384_v47 = vmul.f32 %v364_v35, %v324_v38  ;;  %v385_v48 = vmul.f32 %v365_v36, %v323_v37 }
 0x11f   : > { %430 = vmatpush1.bf16.msra.mxu0 %v400_v34  ;;  %v1565_v34 = vsel %vm420_vm9, %v421_v27, 0 }
 0x120   : > { %v328_v41 = vpop.permute.xlu1 %327  ;;  %v326_v42 = vpop.permute.xlu0 %325 }
 0x121   : > { %v330_v43 = vsel %vm329_vm3, %v326_v42, %v328_v41  ;;  %v331_v44 = vsel %vm329_vm3, %v328_v41, %v326_v42 }
 0x122   : > { %v386_v49 = vmul.f32 %v366_v39, %v331_v44  ;;  %v387_v50 = vmul.f32 %v367_v40, %v330_v43  ;;  %v1003_v39 = vld [vmem:[%s1781_s3] sm:$0xff]  }
 0x124   : > { %v335_v53 = vpop.permute.xlu1 %334  ;;  %v333_v54 = vpop.permute.xlu0 %332  ;;  %v403_v55 = vpack.c.bf16 %v387_v50, %v385_v48  ;;  %v402_v56 = vpack.c.bf16 %v386_v49, %v384_v47 }
 0x125   : > { %v337_v59 = vsel %vm336_vm4, %v333_v54, %v335_v53  ;;  %v338_v60 = vsel %vm336_vm4, %v335_v53, %v333_v54 }
 0x126   : > { %v390_v61 = vmul.f32 %v370_v51, %v337_v59  ;;  %v391_v62 = vmul.f32 %v371_v52, %v338_v60  ;;  %431 = vmatprep.subr.bf16.mxu0 %v403_v55 }
 0x127   : > { %432 = vmatpush1.bf16.msra.mxu0 %v402_v56 }
 0x128   : > { %v342_v63 = vpop.permute.xlu1 %341  ;;  %v340_v2 = vpop.permute.xlu0 %339  ;;  %v405_v3 = vpack.c.bf16 %v391_v62, %v389_v57  ;;  %v404_v4 = vpack.c.bf16 %v390_v61, %v388_v58  ;;  %v612_v61 = vld [vmem:[#allocation7 + $0x80] sm:$0xff]  ;;  %v614_v62 = vld [vmem:[#allocation7 + $0x90] sm:$0xff] }
 0x129   : > { %v344_v7 = vsel %vm343_vm5, %v340_v2, %v342_v63  ;;  %v345_v8 = vsel %vm343_vm5, %v342_v63, %v340_v2 }
 0x12a   : > { %433 = vmatprep.subr.bf16.mxu0 %v405_v3  ;;  %v392_v16 = vmul.f32 %v372_v5, %v344_v7  ;;  %v393_v17 = vmul.f32 %v373_v6, %v345_v8  ;;  %v613_v3 = vld [vmem:[#allocation7 + $0x88] sm:$0xff] }
 0x12b   : > { %434 = vmatpush1.bf16.msra.mxu0 %v404_v4  ;;  %v615_v4 = vld [vmem:[#allocation7 + $0x98] sm:$0xff] }
 0x12c   : > { %v349_v11 = vpop.permute.xlu1 %348  ;;  %v347_v12 = vpop.permute.xlu0 %346 }
 0x12d   : > { %v351_v13 = vsel %vm350_vm6, %v347_v12, %v349_v11  ;;  %v352_v15 = vsel %vm350_vm6, %v349_v11, %v347_v12  ;;  %v1006_v12 = vld [vmem:[#allocation8 + $0x4] ss:$8 sps:$4 sm:$0xff]  }
 0x12e   : > { %v394_v18 = vmul.f32 %v374_v9, %v351_v13  ;;  %v395_v19 = vmul.f32 %v375_v10, %v352_v15  ;;  %903 = vmatprep.mubr.msk.bf16.mxu1 %vm705_vm11, %v1006_v12 }
 0x130   : > { %v356_v22 = vpop.permute.xlu1 %355  ;;  %v354_v23 = vpop.permute.xlu0 %353  ;;  %v407_v24 = vpack.c.bf16 %v395_v19, %v393_v17  ;;  %v406_v25 = vpack.c.bf16 %v394_v18, %v392_v16 }
 0x131   : > { %v358_v30 = vsel %vm357_vm7, %v354_v23, %v356_v22  ;;  %v359_v31 = vsel %vm357_vm7, %v356_v22, %v354_v23 }
 0x132   : > { %v396_v32 = vmul.f32 %v376_v20, %v358_v30  ;;  %v397_v33 = vmul.f32 %v377_v21, %v359_v31  ;;  %435 = vmatprep.subr.bf16.mxu0 %v407_v24 }
 0x133   : > { %436 = vmatpush1.bf16.msra.mxu0 %v406_v25 }
 0x134   : > { %v408_v35 = vpack.c.bf16 %v378_v28, %v396_v32  ;;  %v409_v36 = vpack.c.bf16 %v379_v29, %v397_v33  ;;  %v596_v28 = vld [vmem:[#allocation7] sm:$0xff]  ;;  %v598_v32 = vld [vmem:[#allocation7 + $0x10] sm:$0xff]  ;;  %v597_v33 = vld [vmem:[#allocation7 + $0x8] sm:$0xff] }
 0x136   : > { %v427_v37 = vand.u32 %v1565_v34, %v409_v36  ;;  %v424_v38 = vand.u32 %v1565_v34, %v408_v35  ;;  %v599_v35 = vld [vmem:[#allocation7 + $0x18] sm:$0xff] }
 0x138   : > { %437 = vmatprep.subr.bf16.mxu0 %v427_v37 }
 0x139   : > { %438 = vmatpush1.bf16.msra.mxu0 %v424_v38 }
 0x13c   : > { %896 = vmatmul.mubr.msk.bf16.vlgmr.msra.gmra.mrb[0].mxu0 %vm415_vm10, %v1003_v39 }
 0x20f   : > { %v463_v40 = vpop.f32.mrb[0].mxu0 }
 0x210   : > { %v897_v41 = vmul.f32 -1.442695, %v463_v40  ;;  %v465_v42 = vpop.f32.mrb[1].mxu0 }
 0x211   : > { %v898_v43 = vmul.f32 -1.442695, %v465_v42  ;;  %v467_v44 = vpop.f32.mrb[2].mxu0 }
 0x212   : > { %1015 = vpow2.f32 %v897_v41  ;;  %v899_v45 = vmul.f32 -1.442695, %v467_v44  ;;  %v469_v46 = vpop.f32.mrb[3].mxu0  ;;  %v600_v41 = vld [vmem:[#allocation7 + $0x20] sm:$0xff] }
 0x213   : > { %1017 = vpow2.f32 %v898_v43  ;;  %v900_v47 = vmul.f32 -1.442695, %v469_v46 }
 0x214   : > { %1019 = vpow2.f32 %v899_v45  ;;  %v601_v45 = vld [vmem:[#allocation7 + $0x28] sm:$0xff] }
 0x215   : > { %1021 = vpow2.f32 %v900_v47 }
 0x21c   : > { %v1016_v48 = vpop.eup %1015 }
 0x21d   : > { %v1018_v49 = vpop.eup %1017  ;;  %v484_v50 = vadd.f32 1.0, %v1016_v48  ;;  %v602_v48 = vld [vmem:[#allocation7 + $0x30] sm:$0xff] }
 0x21e   : > { %v1020_v51 = vpop.eup %1019  ;;  %v485_v52 = vadd.f32 1.0, %v1018_v49  ;;  %v603_v49 = vld [vmem:[#allocation7 + $0x38] sm:$0xff] }
 0x21f   : > { %v1022_v53 = vpop.eup %1021  ;;  %1023 = vrcp.f32 %v484_v50  ;;  %v486_v54 = vadd.f32 1.0, %v1020_v51 }
 0x220   : > { %1025 = vrcp.f32 %v485_v52  ;;  %v487_v55 = vadd.f32 1.0, %v1022_v53 }
 0x221   : > { %1027 = vrcp.f32 %v486_v54 }
 0x222   : > { %1029 = vrcp.f32 %v487_v55 }
 0x229   : > { %v1024_v56 = vpop.eup %1023 }
 0x22a   : > { %v1026_v57 = vpop.eup %1025  ;;  %v496_v58 = vmul.f32 %v1024_v56, %v463_v40 }
 0x22b   : > { %v1028_v59 = vpop.eup %1027  ;;  %v497_v60 = vmul.f32 %v1026_v57, %v465_v42 }
 0x22c   : > { %v1030_v63 = vpop.eup %1029  ;;  %v498_v2 = vmul.f32 %v1028_v59, %v467_v44  ;;  %500 = vrot.lane.b32.xlu0 %v496_v58, %s1230_s26  ;;  %v1574_v6 = vmul.f32 %v612_v61, %v496_v58  ;;  %v604_v59 = vld [vmem:[#allocation7 + $0x40] sm:$0xff]  ;;  %v605_v61 = vld [vmem:[#allocation7 + $0x48] sm:$0xff] }
 0x22d   : > { %v499_v5 = vmul.f32 %v1030_v63, %v469_v46  ;;  %v1578_v8 = vmul.f32 %v613_v3, %v497_v60  ;;  %v607_v3 = vld [vmem:[#allocation7 + $0x58] sm:$0xff] }
 0x22e   : > { %502 = vrot.lane.b32.xlu1 %v498_v2, %s1230_s26  ;;  %v1576_v7 = vmul.f32 %v614_v62, %v498_v2 }
 0x22f   : > { %v1580_v9 = vmul.f32 %v615_v4, %v499_v5 }
 0x230   : > { %512 = vrot.lane.b32.xlu0 %v496_v58, %s1229_s24  ;;  %v684_v10 = vpack.c.bf16 %v1576_v7, %v1574_v6  ;;  %v624_v6 = vld [vmem:[#allocation7 + $0xe0] sm:$0xff] }
 0x231   : > { %v685_v11 = vpack.c.bf16 %v1580_v9, %v1578_v8 }
 0x232   : > { %514 = vrot.lane.b32.xlu1 %v498_v2, %s1229_s24 }
 0x234   : > { %524 = vrot.lane.b32.xlu0 %v496_v58, %s1231_s13 }
 0x236   : > { %526 = vrot.lane.b32.xlu1 %v498_v2, %s1231_s13 }
 0x238   : > { %536 = vrot.lane.b32.xlu0 %v496_v58, %s1232_s16 }
 0x23a   : > { %538 = vrot.lane.b32.xlu1 %v498_v2, %s1232_s16 }
 0x23c   : > { %548 = vrot.lane.b32.xlu0 %v496_v58, %s1233_s6 }
 0x23e   : > { %550 = vrot.lane.b32.xlu1 %v498_v2, %s1233_s6 }
 0x240   : > { %560 = vrot.lane.b32.xlu0 %v496_v58, %s1234_s14 }
 0x242   : > { %562 = vrot.lane.b32.xlu1 %v498_v2, %s1234_s14 }
 0x244   : > { %572 = vrot.lane.b32.xlu0 %v496_v58, %s1235_s10 }
 0x246   : > { %574 = vrot.lane.b32.xlu1 %v498_v2, %s1235_s10 }
 0x248   : > { %504 = vrot.lane.b32.xlu0 %v497_v60, %s1230_s26 }
 0x24a   : > { %506 = vrot.lane.b32.xlu1 %v499_v5, %s1230_s26 }
 0x24c   : > { %516 = vrot.lane.b32.xlu0 %v497_v60, %s1229_s24 }
 0x24e   : > { %518 = vrot.lane.b32.xlu1 %v499_v5, %s1229_s24 }
 0x250   : > { %528 = vrot.lane.b32.xlu0 %v497_v60, %s1231_s13 }
 0x252   : > { %530 = vrot.lane.b32.xlu1 %v499_v5, %s1231_s13  ;;  %s1733_s13 = scalar_lea.hbm %s1783_s5, %s910_s17 }
 0x254   : > { %540 = vrot.lane.b32.xlu0 %v497_v60, %s1232_s16 }
 0x256   : > { %542 = vrot.lane.b32.xlu1 %v499_v5, %s1232_s16  ;;  %s763_s16 = scalar_lea.sflag [#allocation4], %s1461_s23 }
 0x258   : > { %584 = vrot.lane.b32.xlu0 %v496_v58, %s1237_s8 }
 0x25a   : > { %586 = vrot.lane.b32.xlu1 %v498_v2, %s1237_s8  ;;  %v606_v2 = vld [vmem:[#allocation7 + $0x50] sm:$0xff] }
 0x25c   : > { %552 = vrot.lane.b32.xlu0 %v497_v60, %s1233_s6 }
 0x25e   : > { %554 = vrot.lane.b32.xlu1 %v499_v5, %s1233_s6  ;;  %s1239_s6 = smov [#allocation10]  }
 0x260   : > { %564 = vrot.lane.b32.xlu0 %v497_v60, %s1234_s14 }
 0x262   : > { %566 = vrot.lane.b32.xlu1 %v499_v5, %s1234_s14  ;;  %s1149_s14 = sshll.u32 %s1239_s6, 4  ;;  %s1150_s14 = int_to_ptr.vmem [resolvable:$false] %s1149_s14 }
 0x263   : > { %p1152_p12 = scmp.lt.s32.totalorder %s1728_s27, %s1150_s14 }
 0x264   : > { %576 = vrot.lane.b32.xlu0 %v497_v60, %s1235_s10 }
 0x266   : > { %578 = vrot.lane.b32.xlu1 %v499_v5, %s1235_s10  ;;  %s1151_s10 = scalar_lea.vmem %s1150_s14, 1024 }
 0x267   : > { %p1153_p2 = scmp.lt.s32.totalorder %s1151_s10, %s1145_s22 }
 0x268   : > { %588 = vrot.lane.b32.xlu0 %v497_v60, %s1237_s8 }
 0x269   : > { %p1154_p1 = por %p1153_p2, %p1152_p12 }
 0x26a   : > { %590 = vrot.lane.b32.xlu1 %v499_v5, %s1237_s8 }
 0x26b   : > { %p1155_p4 = pnand %p1154_p1, %p1148_p7 }
 0x29e   : > { %v501_v13 = vpop.permute.xlu0 %500 }
 0x2a0   : > { %v503_v15 = vpop.permute.xlu1 %502 }
 0x2a2   : > { %v513_v16 = vpop.permute.xlu0 %512 }
 0x2a4   : > { %v515_v17 = vpop.permute.xlu1 %514 }
 0x2a6   : > { %v525_v18 = vpop.permute.xlu0 %524 }
 0x2a8   : > { %v527_v19 = vpop.permute.xlu1 %526 }
 0x2aa   : > { %v537_v20 = vpop.permute.xlu0 %536 }
 0x2ac   : > { %v1616_v21 = vpop.permute.xlu1 %538 }
 0x2ae   : > { %v1618_v22 = vpop.permute.xlu0 %548 }
 0x2b0   : > { %v1620_v23 = vpop.permute.xlu1 %550 }
 0x2b2   : > { %v1622_v24 = vpop.permute.xlu0 %560 }
 0x2b4   : > { %v1624_v25 = vpop.permute.xlu1 %562 }
 0x2b6   : > { %v1626_v26 = vpop.permute.xlu0 %572 }
 0x2b8   : > { %v1628_v27 = vpop.permute.xlu1 %574 }
 0x2ba   : > { %v505_v29 = vpop.permute.xlu0 %504 }
 0x2bb   : > { %v508_v30 = vsel %vm308_vm1, %v501_v13, %v505_v29  ;;  %v510_v31 = vsel %vm308_vm1, %v505_v29, %v501_v13 }
 0x2bc   : > { %v507_v36 = vpop.permute.xlu1 %506  ;;  %v636_v39 = vmul.f32 %v596_v28, %v510_v31  ;;  %v637_v43 = vmul.f32 %v597_v33, %v508_v30  ;;  %v608_v30 = vld [vmem:[#allocation7 + $0x60] sm:$0xff] }
 0x2bd   : > { %v509_v37 = vsel %vm308_vm1, %v503_v15, %v507_v36  ;;  %v511_v38 = vsel %vm308_vm1, %v507_v36, %v503_v15  ;;  %v611_v36 = vld [vmem:[#allocation7 + $0x78] sm:$0xff] }
 0x2be   : > { %v638_v40 = vmul.f32 %v598_v32, %v511_v38  ;;  %v517_v42 = vpop.permute.xlu0 %516  ;;  %v639_v44 = vmul.f32 %v599_v35, %v509_v37  ;;  %v610_v35 = vld [vmem:[#allocation7 + $0x70] sm:$0xff] }
 0x2bf   : > { %v520_v46 = vsel %vm315_vm0, %v513_v16, %v517_v42  ;;  %v522_v47 = vsel %vm315_vm0, %v517_v42, %v513_v16 }
 0x2c0   : > { %v519_v50 = vpop.permute.xlu1 %518  ;;  %v677_v51 = vpack.c.bf16 %v639_v44, %v637_v43  ;;  %v676_v52 = vpack.c.bf16 %v638_v40, %v636_v39  ;;  %v640_v55 = vmul.f32 %v600_v41, %v522_v47  ;;  %v641_v56 = vmul.f32 %v601_v45, %v520_v46 }
 0x2c1   : > { %v521_v53 = vsel %vm315_vm0, %v515_v17, %v519_v50  ;;  %v523_v54 = vsel %vm315_vm0, %v519_v50, %v515_v17  ;;  %v617_v50 = vld [vmem:[#allocation7 + $0xa8] sm:$0xff] }
 0x2c2   : > { %v642_v57 = vmul.f32 %v602_v48, %v523_v54  ;;  %v643_v58 = vmul.f32 %v603_v49, %v521_v53  ;;  %v529_v60 = vpop.permute.xlu0 %528  ;;  %715 = vmatprep.subr.bf16.mxu1 %v677_v51  ;;  %v616_v48 = vld [vmem:[#allocation7 + $0xa0] sm:$0xff]  ;;  %v619_v53 = vld [vmem:[#allocation7 + $0xb8] sm:$0xff] }
 0x2c3   : > { %v532_v62 = vsel %vm322_vm2, %v525_v18, %v529_v60  ;;  %v534_v63 = vsel %vm322_vm2, %v529_v60, %v525_v18  ;;  %716 = vmatpush1.bf16.msra.mxu1 %v676_v52  ;;  %v609_v18 = vld [vmem:[#allocation7 + $0x68] sm:$0xff]  ;;  %v618_v52 = vld [vmem:[#allocation7 + $0xb0] sm:$0xff]  ;;  %v620_v60 = vld [vmem:[#allocation7 + $0xc0] sm:$0xff] }
 0x2c4   : > { %v531_v4 = vpop.permute.xlu1 %530  ;;  %v679_v5 = vpack.c.bf16 %v643_v58, %v641_v56  ;;  %v678_v12 = vpack.c.bf16 %v642_v57, %v640_v55  ;;  %v644_v16 = vmul.f32 %v604_v59, %v534_v63  ;;  %v645_v17 = vmul.f32 %v605_v61, %v532_v62  ;;  %v621_v62 = vld [vmem:[#allocation7 + $0xc8] sm:$0xff] }
 0x2c5   : > { %v533_v13 = vsel %vm322_vm2, %v527_v19, %v531_v4  ;;  %v535_v15 = vsel %vm322_vm2, %v531_v4, %v527_v19 }
 0x2c6   : > { %v646_v28 = vmul.f32 %v606_v2, %v535_v15  ;;  %v647_v29 = vmul.f32 %v607_v3, %v533_v13  ;;  %v541_v31 = vpop.permute.xlu0 %540  ;;  %717 = vmatprep.subr.bf16.mxu1 %v679_v5 }
 0x2c7   : > { %v544_v32 = vsel %vm329_vm3, %v537_v20, %v541_v31  ;;  %v546_v33 = vsel %vm329_vm3, %v541_v31, %v537_v20  ;;  %718 = vmatpush1.bf16.msra.mxu1 %v678_v12  ;;  %v633_v12 = vld [vmem:[#allocation7 + $0x128] sm:$0xff] }
 0x2c8   : > { %v543_v37 = vpop.permute.xlu1 %542  ;;  %v681_v38 = vpack.c.bf16 %v647_v29, %v645_v17  ;;  %v680_v19 = vpack.c.bf16 %v646_v28, %v644_v16  ;;  %v648_v41 = vmul.f32 %v608_v30, %v546_v33  ;;  %v649_v42 = vmul.f32 %v609_v18, %v544_v32  ;;  %v626_v29 = vld [vmem:[#allocation7 + $0xf0] sm:$0xff]  ;;  %v632_v33 = vld [vmem:[#allocation7 + $0x120] sm:$0xff] }
 0x2c9   : > { %v545_v39 = vsel %vm329_vm3, %v1616_v21, %v543_v37  ;;  %v547_v40 = vsel %vm329_vm3, %v543_v37, %v1616_v21  ;;  %v673_v32 = vmul.f32 %v633_v12, %v1479_v1  ;;  %v635_v37 = vld [vmem:[#allocation7 + $0x138] sm:$0x1] }
 0x2ca   : > { %v650_v43 = vmul.f32 %v610_v35, %v547_v40  ;;  %v651_v44 = vmul.f32 %v611_v36, %v545_v39  ;;  %v1664_v45 = vpop.permute.xlu0 %584  ;;  %719 = vmatprep.subr.bf16.mxu1 %v681_v38  ;;  %v628_v40 = vld [vmem:[#allocation7 + $0x100] sm:$0xff] }
 0x2cb   : > { %720 = vmatpush1.bf16.msra.mxu1 %v680_v19 }
 0x2cc   : > { %v1666_v20 = vpop.permute.xlu1 %586  ;;  %v683_v46 = vpack.c.bf16 %v651_v44, %v649_v42  ;;  %v682_v47 = vpack.c.bf16 %v650_v43, %v648_v41  ;;  %v629_v42 = vld [vmem:[#allocation7 + $0x108] sm:$0xff]  ;;  %v630_v44 = vld [vmem:[#allocation7 + $0x110] sm:$0xff] }
 0x2ce   : > { %v553_v49 = vpop.permute.xlu0 %552  ;;  %721 = vmatprep.subr.bf16.mxu1 %v683_v46  ;;  %v672_v46 = vmul.f32 %v632_v33, %v1477_v0 }
 0x2cf   : > { %v556_v21 = vsel %vm336_vm4, %v1618_v22, %v553_v49  ;;  %v558_v51 = vsel %vm336_vm4, %v553_v49, %v1618_v22  ;;  %722 = vmatpush1.bf16.msra.mxu1 %v682_v47 }
 0x2d0   : > { %v555_v54 = vpop.permute.xlu1 %554  ;;  %723 = vmatprep.subr.bf16.mxu1 %v685_v11  ;;  %v656_v57 = vmul.f32 %v616_v48, %v556_v21  ;;  %v657_v58 = vmul.f32 %v617_v50, %v558_v51  ;;  %v622_v11 = vld [vmem:[#allocation7 + $0xd0] sm:$0xff]  ;;  %v695_v50 = vpack.c.bf16 %v635_v37, %v673_v32 }
 0x2d1   : > { %v557_v55 = vsel %vm336_vm4, %v1620_v23, %v555_v54  ;;  %v559_v56 = vsel %vm336_vm4, %v555_v54, %v1620_v23  ;;  %v623_v23 = vld [vmem:[#allocation7 + $0xd8] sm:$0xff]  ;;  %v634_v21 = vld [vmem:[#allocation7 + $0x130] sm:$0x1] }
 0x2d2   : > { %v658_v59 = vmul.f32 %v618_v52, %v557_v55  ;;  %v659_v22 = vmul.f32 %v619_v53, %v559_v56  ;;  %v565_v61 = vpop.permute.xlu0 %564  ;;  %v694_v0 = vpack.c.bf16 %v634_v21, %v672_v46 }
 0x2d3   : > { %v568_v8 = vsel %vm343_vm5, %v1622_v24, %v565_v61  ;;  %v570_v9 = vsel %vm343_vm5, %v565_v61, %v1622_v24  ;;  %724 = vmatpush1.bf16.msra.mxu1 %v684_v10  ;;  %v625_v10 = vld [vmem:[#allocation7 + $0xe8] sm:$0xff] }
 0x2d4   : > { %v567_v63 = vpop.permute.xlu1 %566  ;;  %v687_v2 = vpack.c.bf16 %v659_v22, %v657_v58  ;;  %v686_v3 = vpack.c.bf16 %v658_v59, %v656_v57  ;;  %v660_v13 = vmul.f32 %v620_v60, %v568_v8  ;;  %v661_v24 = vmul.f32 %v621_v62, %v570_v9 }
 0x2d5   : > { %v569_v4 = vsel %vm343_vm5, %v1624_v25, %v567_v63  ;;  %v571_v5 = vsel %vm343_vm5, %v567_v63, %v1624_v25  ;;  %v627_v25 = vld [vmem:[#allocation7 + $0xf8] sm:$0xff]  ;;  %v713_v58 = vand.u32 %v695_v50, %v1565_v34  ;;  %v710_v59 = vand.u32 %v694_v0, %v1565_v34 }
 0x2d6   : > { %v662_v15 = vmul.f32 %v622_v11, %v569_v4  ;;  %v663_v16 = vmul.f32 %v623_v23, %v571_v5  ;;  %v577_v7 = vpop.permute.xlu0 %576  ;;  %725 = vmatprep.subr.bf16.mxu1 %v687_v2 }
 0x2d7   : > { %v580_v17 = vsel %vm350_vm6, %v1626_v26, %v577_v7  ;;  %v582_v28 = vsel %vm350_vm6, %v577_v7, %v1626_v26  ;;  %726 = vmatpush1.bf16.msra.mxu1 %v686_v3 }
 0x2d8   : > { %v579_v30 = vpop.permute.xlu1 %578  ;;  %v689_v31 = vpack.c.bf16 %v663_v16, %v661_v24  ;;  %v688_v18 = vpack.c.bf16 %v662_v15, %v660_v13  ;;  %v664_v38 = vmul.f32 %v624_v6, %v580_v17  ;;  %v665_v26 = vmul.f32 %v625_v10, %v582_v28 }
 0x2d9   : > { %v581_v35 = vsel %vm350_vm6, %v1628_v27, %v579_v30  ;;  %v583_v36 = vsel %vm350_vm6, %v579_v30, %v1628_v27  ;;  %v631_v27 = vld [vmem:[#allocation7 + $0x118] sm:$0xff] }
 0x2da   : > { %v666_v19 = vmul.f32 %v626_v29, %v581_v35  ;;  %v667_v39 = vmul.f32 %v627_v25, %v583_v36  ;;  %v589_v41 = vpop.permute.xlu0 %588  ;;  %727 = vmatprep.subr.bf16.mxu1 %v689_v31 }
 0x2db   : > { %v592_v1 = vsel %vm357_vm7, %v1664_v45, %v589_v41  ;;  %v594_v43 = vsel %vm357_vm7, %v589_v41, %v1664_v45  ;;  %728 = vmatpush1.bf16.msra.mxu1 %v688_v18 }
 0x2dc   : > { %v591_v47 = vpop.permute.xlu1 %590  ;;  %v691_v48 = vpack.c.bf16 %v667_v39, %v665_v26  ;;  %v690_v49 = vpack.c.bf16 %v666_v19, %v664_v38  ;;  %v668_v53 = vmul.f32 %v628_v40, %v592_v1  ;;  %v669_v45 = vmul.f32 %v629_v42, %v594_v43 }
 0x2dd   : > { %v593_v51 = vsel %vm357_vm7, %v1666_v20, %v591_v47  ;;  %v595_v52 = vsel %vm357_vm7, %v591_v47, %v1666_v20 }
 0x2de   : > { %v670_v54 = vmul.f32 %v630_v44, %v593_v51  ;;  %v671_v55 = vmul.f32 %v631_v27, %v595_v52  ;;  %729 = vmatprep.subr.bf16.mxu1 %v691_v48 }
 0x2df   : > { %730 = vmatpush1.bf16.msra.mxu1 %v690_v49 }
 0x2e0   : > { %v693_v56 = vpack.c.bf16 %v671_v55, %v669_v45  ;;  %v692_v57 = vpack.c.bf16 %v670_v54, %v668_v53 }
 0x2e2   : > { %731 = vmatprep.subr.bf16.mxu1 %v693_v56 }
 0x2e3   : > { %732 = vmatpush1.bf16.msra.mxu1 %v692_v57 }
 0x2e4   : > { %733 = vmatprep.subr.bf16.mxu1 %v713_v58 }
 0x2e7   : > { %734 = vmatpush1.bf16.msra.mxu1 %v710_v59 }
 0x2ea   : > { %748 = vmatmul.mubr.bf16.vlgmr.msra.gmra.mrb[0].mxu1 %v1004_v14 }
 0x3bd   : > { %v749_v20 = vpop.f32.mrb[0].mxu1 }
 0x3be   : > { %758 = vst [vmem:[%s284_s15] sm:$0xff] %v749_v20  ;;  %v751_v22 = vpop.f32.mrb[1].mxu1 }
 0x3bf   : > { %759 = vst [vmem:[%s284_s15 + $0x8] sm:$0xff] %v751_v22  ;;  %v753_v34 = vpop.f32.mrb[2].mxu1 }
 0x3c0   : > { %760 = vst [vmem:[%s284_s15 + $0x10] sm:$0xff] %v753_v34  ;;  %v755_v60 = vpop.f32.mrb[3].mxu1 }
 0x3c1   : > { %761 = vst [vmem:[%s284_s15 + $0x18] sm:$0xff] %v755_v60 }
 0x3c2   : > { %1158 = shalt.err (!%p1155_p4)
}
 0x3c3   : > { %s1159_s8 = scalar_lea.hbm %s1733_s13, 512  ;;  %s1163_s12 = scalar_lea.hbm %s1783_s5, 1024 }
 0x3c4   : > { %p1160_p0 = scmp.ne.s32.totalorder %s1733_s13, %s1159_s8  ;;  %p1164_p11 = scmp.lt.u32.totalorder %s1733_s13, %s1783_s5 }
 0x3c5   : > { %p1165_p13 = scmp.lt.u32.totalorder %s1163_s12, %s1159_s8  ;;  %p1167_p10 = scmp.lt.u32.totalorder %s1159_s8, %s1733_s13 }
 0x3c6   : > { %p1161_p9 = pnand %p1160_p0, %p1416_p5 }
 0x3c7   : > { %p1166_p6 = por %p1165_p13, %p1164_p11 }
 0x3c8   : > { %p1162_p8 = pneg %p1161_p9 }
 0x3c9   : > { %p1168_p3 = por %p1167_p10, %p1166_p6 }
 0x3cb   : > { %p1169_p7 = pnand %p1168_p3, %p1162_p8 }
 0x3cd   : > { %1172 = shalt.err (!%p1169_p7)
}
 0x3ce   : > { %s1240_s30 = smov 256  }
 0x3cf   : > { %925 = dma.vmem_to_hbm [thread:$0]  (%p1416_p5), %s1728_s27, 512, %s1733_s13, %s763_s16, %s1240_s30, %s1240_s30, %s1229_s24  }
 0x3d0 PF: > { %s791_s26 = sand.u32 1, %s1207_s18   ;;  %p1801_p12 = scmp.ne.s32.totalorder %s1788_s25, 0 }
 0x3d1   : > { %p1802_p2 = scmp.ge.s32.totalorder %s1219_s21, 2  ;;  %s792_s22 = scalar_lea.sflag [#allocation4], %s791_s26 }
 0x3d3   : > { %p942_p1 = pnand %p1802_p2, %p1801_p12 }
 0x3d5   : > { %1202 = dma.done.wait (!%p942_p1), %s792_s22, 512  }
 0x3d6   : > { %1204 = vsyncadd (!%p942_p1), %s792_s22, 4294966784  ;;  %p20_p4 = scmp.ge.s32.totalorder %s1402_s28, 4   ;;  %s1803_s18 = smov %s1211_s19 }
 0x3d7   : > { %s1804_s19 = smov %s1215_s20  ;;  %s1805_s20 = smov %s1412_s7 }
 0x3d8   : > { %s1806_s21 = smov %s1402_s28  ;;  %22 = sbr.rel (!%p20_p4) target bundleno = 7 (0x7), region = 97 }
 0x3df   :  { %797 = vsyncpa [#allocation3], 1 }
 0x3e0   :  { %799 = vsyncpa [#allocation3 + $0x1], 1 }
 0x3e1   :  { %800 = vsyncpa [#allocation6], 1 }
 0x3e2   :  { %801 = vsyncpa [#allocation9], 1 }
 0x3e3   :  { %802 = vsyncpa [#allocation4], 1 }
 0x3e4   :  { %804 = vsyncpa [#allocation4 + $0x1], 1 }

</bundles_post_ra>
